<compile_context>
chip_gen: v6e
topology: v6e:2x2x1
jax: 0.10.0
libtpu: 0.0.40
codegen_flags: <defaults>
</compile_context>

<pallas_src>
import functools

import jax
import jax.numpy as jnp
from jax.experimental import pallas as pl
from jax.experimental.pallas import tpu as pltpu


_VMEM_LIMIT = 32 * 1024 * 1024          # safe scoped-VMEM cap on v5e/v6e/v7x
_XW_RESIDENT_BYTES = 2 * 1024 * 1024    # keep XW_l resident below this size


# --------------------------------------------------------------------------- #
# Kernel 1: per-layer precompute.
#   XW_l = X @ Wl^T           (agg dtype, streamed by the aggregation kernel)
#   XW_r = X @ Wr^T + bias    (f32, consumed once per output tile at finalize)
# One fused matmul against [Wl^T | Wr^T]  (2*fout lanes wide).
# --------------------------------------------------------------------------- #
def _xw_kernel(x_ref, wcat_ref, b_ref, xwl_ref, xwr_ref, *, fout):
    res = jnp.dot(x_ref[...], wcat_ref[...], preferred_element_type=jnp.float32)
    xwl_ref[...] = res[:, :fout].astype(xwl_ref.dtype)
    xwr_ref[...] = (res[:, fout:] + b_ref[...]).astype(xwr_ref.dtype)


def _precompute_xw(x, wlT, wrT, b, *, tm, agg_dtype):
    n_pad, fin = x.shape
    fout = wlT.shape[1]
    wcat = jnp.concatenate([wlT, wrT], axis=1)               # (fin, 2*fout)

    kernel = functools.partial(_xw_kernel, fout=fout)
    return pl.pallas_call(
        kernel,
        out_shape=(jax.ShapeDtypeStruct((n_pad, fout), agg_dtype),
                   jax.ShapeDtypeStruct((n_pad, fout), jnp.float32)),
        grid_spec=pltpu.PrefetchScalarGridSpec(
            num_scalar_prefetch=0,
            grid=(n_pad // tm,),
            in_specs=[
                pl.BlockSpec((tm, fin), lambda i: (i, 0)),       # X rows
                pl.BlockSpec((fin, 2 * fout), lambda i: (0, 0)),  # [Wl|Wr] res.
                pl.BlockSpec((1, fout), lambda i: (0, 0)),        # bias  res.
            ],
            out_specs=[pl.BlockSpec((tm, fout), lambda i: (i, 0)),
                       pl.BlockSpec((tm, fout), lambda i: (i, 0))],
        ),
        compiler_params=pltpu.CompilerParams(
            dimension_semantics=("parallel",),
            vmem_limit_bytes=_VMEM_LIMIT),
    )(x, wcat, b)


# --------------------------------------------------------------------------- #
# Kernel 2: aggregation + finalize (mean scale, root term, epilogue).
# Grid = (row_tiles_of_output, reduction_tiles_over_A_columns).
# --------------------------------------------------------------------------- #
def _agg_kernel(a_ref, xwl_ref, xwr_ref, dinv_ref, out_ref, acc_ref, *,
                tk, xw_resident, normalize_relu, softmax_valid):
    k = pl.program_id(1)

    @pl.when(k == 0)
    def _init():
        acc_ref[...] = jnp.zeros_like(acc_ref)

    if xw_resident:
        # XW_l is fully VMEM-resident (constant index_map); slice the k chunk.
        off = pl.multiple_of(k * tk, 128)
        xwl = xwl_ref[pl.ds(off, tk), :]
    else:
        xwl = xwl_ref[...]

    # int8 0/1 adjacency -> widen to the XW_l dtype so the MXU sees a native
    # bf16 (or f32) matmul; f32 accumulation.
    a = a_ref[...].astype(jnp.float32).astype(xwl.dtype)
    acc_ref[...] += jnp.dot(a, xwl, preferred_element_type=jnp.float32)

    @pl.when(k == pl.num_programs(1) - 1)
    def _finalize():
        # mean aggregation = deferred exact f32 1/deg row scale, + root term.
        h = acc_ref[...] * dinv_ref[...] + xwr_ref[...]

        if normalize_relu:
            # F.normalize(h, p=2, dim=-1, eps=1e-12) == h / max(||h||, 1e-12)
            ss = jnp.sum(h * h, axis=-1, keepdims=True)
            h = h * jax.lax.rsqrt(jnp.maximum(ss, 1e-24))
            h = jnp.maximum(h, 0.0)                            # fused ReLU

        if softmax_valid is not None:
            # Mask padded class columns, softmax over the valid ones.
            col = jax.lax.broadcasted_iota(jnp.int32, h.shape, 1)
            h = jnp.where(col < softmax_valid, h, -1e30)
            m = jnp.max(h, axis=-1, keepdims=True)
            e = jnp.exp(h - m)
            denom = jnp.sum(e, axis=-1, keepdims=True)
            h = e * pl.reciprocal(denom, approx=False)         # exact, off path

        out_ref[...] = h.astype(out_ref.dtype)


def _sage_aggregate(a_i8, xwl, xwr, dinv, *, tm, tk, xw_resident,
                    normalize_relu, softmax_valid, out_dtype):
    n_pad = a_i8.shape[0]
    fout = xwl.shape[1]
    grid = (n_pad // tm, n_pad // tk)

    if xw_resident:
        xwl_spec = pl.BlockSpec((n_pad, fout), lambda i, k: (0, 0))
    else:
        xwl_spec = pl.BlockSpec((tk, fout), lambda i, k: (k, 0))

    kernel = functools.partial(_agg_kernel, tk=tk, xw_resident=xw_resident,
                               normalize_relu=normalize_relu,
                               softmax_valid=softmax_valid)

    return pl.pallas_call(
        kernel,
        out_shape=jax.ShapeDtypeStruct((n_pad, fout), out_dtype),
        grid_spec=pltpu.PrefetchScalarGridSpec(
            num_scalar_prefetch=0,
            grid=grid,
            in_specs=[
                pl.BlockSpec((tm, tk), lambda i, k: (i, k)),     # A tile (int8)
                xwl_spec,                                        # X @ Wl^T
                pl.BlockSpec((tm, fout), lambda i, k: (i, 0)),   # X @ Wr^T + b
                pl.BlockSpec((tm, 1), lambda i, k: (i, 0)),      # 1/deg (f32)
            ],
            out_specs=pl.BlockSpec((tm, fout), lambda i, k: (i, 0)),
            scratch_shapes=[pltpu.VMEM((tm, fout), jnp.float32)],
        ),
        compiler_params=pltpu.CompilerParams(
            dimension_semantics=("parallel", "arbitrary"),
            vmem_limit_bytes=_VMEM_LIMIT),
    )(a_i8, xwl, xwr, dinv)


# --------------------------------------------------------------------------- #
# Wrapper
# --------------------------------------------------------------------------- #
def _round_up(v, m):
    return ((v + m - 1) // m) * m


def _pad2(a, rows, cols):
    return jnp.pad(a, ((0, rows - a.shape[0]), (0, cols - a.shape[1])))


def _pick_tile(n_pad, pref):
    t = min(pref, n_pad)
    while n_pad % t != 0:          # n_pad is a multiple of 128 -> terminates
        t //= 2
    return t


def _pick_row_tile(n_pad, pref):
    t = _pick_tile(n_pad, pref)
    # v7x megacore: keep the "parallel" row grid even (2 TCs) when >1 tile.
    if (n_pad // t) > 1 and (n_pad // t) % 2 == 1 and t >= 256:
        t //= 2
    return t


def net_sage_forward(x, edge_index, params, *, agg_dtype=jnp.bfloat16,
                     tm=512, tk=1024, xw_resident=None):
    """x: (N, F) float32 node features; edge_index: (2, E) int32 (src, dst)."""
    n, f = x.shape
    hidden = params["w1l"].shape[0]
    num_classes = params["w2l"].shape[0]

    # Lane/sublane friendly padded sizes.
    n_pad = _round_up(n, 128)
    f_pad = _round_up(max(f, 128), 128)
    h_pad = _round_up(max(hidden, 128), 128)
    c_pad = _round_up(max(num_classes, 128), 128)

    # Binary (count) adjacency stored int8 (exact); exact f32 1/deg applied in
    # the kernel finalize.  Dense A is glue for small graphs (see file TODO).
    src, dst = edge_index[0], edge_index[1]
    adj = jnp.zeros((n, n), jnp.float32).at[dst, src].add(1.0)
    deg = jnp.sum(adj, axis=1, keepdims=True)
    dinv = _pad2(1.0 / jnp.maximum(deg, 1.0), n_pad, 1).astype(jnp.float32)
    a_i8 = _pad2(adj, n_pad, n_pad).astype(jnp.int8)
    # TODO(synk): int8 counts wrap past 127 parallel edges; real graphs use 0/1.

    xp = _pad2(x.astype(jnp.float32), n_pad, f_pad)

    # Pre-transposed, zero-padded f32 weights (stored (in, out)).
    w1lT = _pad2(params["w1l"].T.astype(jnp.float32), f_pad, h_pad)
    w1rT = _pad2(params["w1r"].T.astype(jnp.float32), f_pad, h_pad)
    b1 = _pad2(params["b1"].reshape(1, -1).astype(jnp.float32), 1, h_pad)
    w2lT = _pad2(params["w2l"].T.astype(jnp.float32), h_pad, c_pad)
    w2rT = _pad2(params["w2r"].T.astype(jnp.float32), h_pad, c_pad)
    b2 = _pad2(params["b2"].reshape(1, -1).astype(jnp.float32), 1, c_pad)

    tm_ = _pick_row_tile(n_pad, tm)
    tk_ = _pick_tile(n_pad, tk)

    def resident(fout):
        if xw_resident is not None:
            return xw_resident
        return n_pad * fout * jnp.dtype(agg_dtype).itemsize <= _XW_RESIDENT_BYTES

    # ---- conv1 (+ fused L2 normalize + ReLU) ----
    xw1l, xw1r = _precompute_xw(xp, w1lT, w1rT, b1, tm=tm_, agg_dtype=agg_dtype)
    h1 = _sage_aggregate(a_i8, xw1l, xw1r, dinv, tm=tm_, tk=tk_,
                         xw_resident=resident(h_pad),
                         normalize_relu=True, softmax_valid=None,
                         out_dtype=jnp.float32)

    # ---- conv2 (+ fused softmax over the valid class columns) ----
    xw2l, xw2r = _precompute_xw(h1, w2lT, w2rT, b2, tm=tm_, agg_dtype=agg_dtype)
    out = _sage_aggregate(a_i8, xw2l, xw2r, dinv, tm=tm_, tk=tk_,
                          xw_resident=resident(c_pad),
                          normalize_relu=False, softmax_valid=num_classes,
                          out_dtype=jnp.float32)
    return out[:n, :num_classes]


# --------------------------------------------------------------------------- #
# Pure-JAX reference mirroring PyG SAGEConv math (correctness check).
# --------------------------------------------------------------------------- #
def _reference_forward(x, edge_index, params):
    n = x.shape[0]
    src, dst = edge_index[0], edge_index[1]
    adj = jnp.zeros((n, n), jnp.float32).at[dst, src].add(1.0)
    a = adj / jnp.maximum(jnp.sum(adj, axis=1, keepdims=True), 1.0)

    h1 = (a @ x) @ params["w1l"].T + x @ params["w1r"].T + params["b1"]
    h1 = h1 / jnp.maximum(jnp.sqrt(jnp.sum(h1 * h1, -1, keepdims=True)), 1e-12)
    h1 = jnp.maximum(h1, 0.0)
    h2 = (a @ h1) @ params["w2l"].T + h1 @ params["w2r"].T + params["b2"]
    return jax.nn.softmax(h2, axis=1)


def init_params(key, num_node_features, num_classes, hidden=16):
    ks = jax.random.split(key, 6)

    def lin(k, out_d, in_d):
        return (jax.random.normal(k, (out_d, in_d), jnp.float32)
                / jnp.sqrt(jnp.float32(in_d)))

    return {
        "w1l": lin(ks[0], hidden, num_node_features),   # lin_l of conv1 (bias)
        "w1r": lin(ks[1], hidden, num_node_features),   # lin_r of conv1
        "b1":  0.01 * jax.random.normal(ks[2], (1, hidden), jnp.float32),
        "w2l": lin(ks[3], num_classes, hidden),
        "w2r": lin(ks[4], num_classes, hidden),
        "b2":  0.01 * jax.random.normal(ks[5], (1, num_classes), jnp.float32),
    }


if __name__ == "__main__":
    key = jax.random.PRNGKey(0)
    k_x, k_p = jax.random.split(key)

    num_nodes = 8
    num_node_features = 4
    num_classes = 4

    x = jax.random.normal(k_x, (num_nodes, num_node_features), jnp.float32)

    # Deterministic graph: directed ring both ways + a couple of chords.
    i = jnp.arange(num_nodes, dtype=jnp.int32)
    src = jnp.concatenate([i, (i + 1) % num_nodes, jnp.array([0, 3], jnp.int32)])
    dst = jnp.concatenate([(i + 1) % num_nodes, i, jnp.array([4, 7], jnp.int32)])
    edge_index = jnp.stack([src, dst], axis=0)

    params = init_params(k_p, num_node_features, num_classes)

    ref = _reference_forward(x, edge_index, params)

    # Default path: int8 adjacency + bf16 XW_l (f32 accumulation), resident XW.
    out = jax.block_until_ready(net_sage_forward(x, edge_index, params))
    assert out.shape == (num_nodes, num_classes)
    assert jnp.allclose(out, ref, atol=2e-2, rtol=2e-2)
    assert jnp.allclose(jnp.sum(out, axis=1), jnp.ones((num_nodes,)), atol=1e-3)

    # Full-f32 aggregation path (tighter tolerance).
    out_f32 = jax.block_until_ready(
        net_sage_forward(x, edge_index, params, agg_dtype=jnp.float32))
    assert jnp.allclose(out_f32, ref, atol=5e-3, rtol=5e-3)
    assert jnp.allclose(jnp.sum(out_f32, axis=1), jnp.ones((num_nodes,)),
                        atol=1e-3)

    # Streamed (non-resident) XW_l path exercised explicitly.
    out_stream = jax.block_until_ready(
        net_sage_forward(x, edge_index, params, xw_resident=False))
    assert jnp.allclose(out_stream, ref, atol=2e-2, rtol=2e-2)

    print("KERNEL_OK")
</pallas_src>

<mosaic_0001>
module attributes {stable_mosaic.version = 11 : i64} {
  func.func @_xw_kernel(%arg0: i32, %arg1: memref<128x128xf32, #tpu.memory_space<vmem>>, %arg2: memref<128x256xf32, #tpu.memory_space<vmem>>, %arg3: memref<1x128xf32, #tpu.memory_space<vmem>>, %arg4: memref<128x128xbf16, #tpu.memory_space<vmem>>, %arg5: memref<128x128xf32, #tpu.memory_space<vmem>>) attributes {dimension_semantics = [#tpu.dimension_semantics<parallel>], iteration_bounds = array<i64: 1>, scalar_prefetch = 0 : i64, scratch_operands = 0 : i64, tpu.core_type = #tpu.core_type<tc>, window_params = [{transform_indices = @transform_0, window_bounds = array<i64: 128, 128>}, {pipeline_mode = #tpu.pipeline_mode<synchronous>, transform_indices = @transform_1, window_bounds = array<i64: 128, 256>}, {pipeline_mode = #tpu.pipeline_mode<synchronous>, transform_indices = @transform_2, window_bounds = array<i64: 1, 128>}, {transform_indices = @transform_3, window_bounds = array<i64: 128, 128>}, {transform_indices = @transform_4, window_bounds = array<i64: 128, 128>}]} {
    %c0 = arith.constant 0 : index
    %c0_0 = arith.constant 0 : index
    %0 = vector.load %arg1[%c0, %c0_0] : memref<128x128xf32, #tpu.memory_space<vmem>>, vector<128x128xf32>
    %c0_1 = arith.constant 0 : index
    %c0_2 = arith.constant 0 : index
    %1 = vector.load %arg2[%c0_1, %c0_2] : memref<128x256xf32, #tpu.memory_space<vmem>>, vector<128x256xf32>
    %cst = arith.constant dense<0.000000e+00> : vector<128x256xf32>
    %2 = tpu.matmul %0, %1, %cst {dimension_numbers = #tpu.dot_dimension_numbers<[1], [0], [0], [1], [0, 0, 1, 1], [], []>} : vector<128x128xf32>, vector<128x256xf32>, vector<128x256xf32> -> vector<128x256xf32>
    %3 = vector.extract_strided_slice %2 {offsets = [0, 0], sizes = [128, 128], strides = [1, 1]} : vector<128x256xf32> to vector<128x128xf32>
    %4 = arith.truncf %3 : vector<128x128xf32> to vector<128x128xbf16>
    %c0_3 = arith.constant 0 : index
    %c0_4 = arith.constant 0 : index
    %5 = vector.load %arg4[%c0_3, %c0_4] : memref<128x128xbf16, #tpu.memory_space<vmem>>, vector<128x128xbf16>
    tpu.vector_store %arg4[%c0_3, %c0_4], %4 {strides = array<i32>} : memref<128x128xbf16, #tpu.memory_space<vmem>>, vector<128x128xbf16>,
    %6 = vector.extract_strided_slice %2 {offsets = [0, 128], sizes = [128, 128], strides = [1, 1]} : vector<128x256xf32> to vector<128x128xf32>
    %c0_5 = arith.constant 0 : index
    %c0_6 = arith.constant 0 : index
    %7 = vector.load %arg3[%c0_5, %c0_6] : memref<1x128xf32, #tpu.memory_space<vmem>>, vector<1x128xf32>
    %8 = vector.broadcast %7 : vector<1x128xf32> to vector<128x128xf32>
    %9 = arith.addf %6, %8 : vector<128x128xf32>
    %c0_7 = arith.constant 0 : index
    %c0_8 = arith.constant 0 : index
    %10 = vector.load %arg5[%c0_7, %c0_8] : memref<128x128xf32, #tpu.memory_space<vmem>>, vector<128x128xf32>
    tpu.vector_store %arg5[%c0_7, %c0_8], %9 {strides = array<i32>} : memref<128x128xf32, #tpu.memory_space<vmem>>, vector<128x128xf32>,
    return
  }
  func.func @transform_0(%arg0: i32) -> (i32, i32) {
    %c0_i32 = arith.constant 0 : i32
    %c0_i32_0 = arith.constant 0 : i32
    return %arg0, %c0_i32 : i32, i32
  }
  func.func @transform_1(%arg0: i32) -> (i32, i32) {
    %c0_i32 = arith.constant 0 : i32
    %c0_i32_0 = arith.constant 0 : i32
    %c0_i32_1 = arith.constant 0 : i32
    return %c0_i32, %c0_i32_0 : i32, i32
  }
  func.func @transform_2(%arg0: i32) -> (i32, i32) {
    %c0_i32 = arith.constant 0 : i32
    %c0_i32_0 = arith.constant 0 : i32
    %c0_i32_1 = arith.constant 0 : i32
    return %c0_i32, %c0_i32_0 : i32, i32
  }
  func.func @transform_3(%arg0: i32) -> (i32, i32) {
    %c0_i32 = arith.constant 0 : i32
    %c0_i32_0 = arith.constant 0 : i32
    return %arg0, %c0_i32 : i32, i32
  }
  func.func @transform_4(%arg0: i32) -> (i32, i32) {
    %c0_i32 = arith.constant 0 : i32
    %c0_i32_0 = arith.constant 0 : i32
    return %arg0, %c0_i32 : i32, i32
  }
}

</mosaic_0001>

<bundles_post_ra>
// kernel: tpu_custom_call.1
= control target key start
LH: loop header
LB: loop body
LE: loop exit
PB: predicated region body
PF: predicated region fallthrough
CT: control target
= control target key end

     0   :  { %10 = vsyncpa [#allocation3], 0  ;;  %s710_s0 = inlined_call_operand.hbm [shape: f32[128,128], index: 0, kind: input, shape index: {}]   ;;  %s711_s1 = inlined_call_operand.hbm [shape: f32[128,256], index: 1, kind: input, shape index: {}]   ;;  %s712_s2 = inlined_call_operand.vmem [shape: f32[1,128], index: 2, kind: input, shape index: {}]   ;;  %s713_s3 = inlined_call_operand.hbm [shape: bf16[128,128], index: 3, kind: output, shape index: {0}]   ;;  %s714_s4 = inlined_call_operand.hbm [shape: f32[128,128], index: 4, kind: output, shape index: {1}]  }
   0x1   :  { %11 = vsyncpa [#allocation6], 0 }
   0x2   :  { %12 = vsyncpa [#allocation4], 0 }
   0x3   :  { %13 = vsyncpa [#allocation9], 0  ;;  %s619_s15 = smov [#allocation2]  }
   0x4   :  { %s19_s16 = sshll.u32 %s619_s15, 4  ;;  %s20_s16 = int_to_ptr.vmem [resolvable:$true] %s19_s16 }
   0x5   :  { %s539_s17 = scalar_lea.vmem %s20_s16, 2048  ;;  %p544_p1 = scmp.lt.s32.totalorder %s20_s16, %s20_s16 }
   0x6   :  { %p540_p0 = scmp.ne.s32.totalorder %s20_s16, %s539_s17  ;;  %p545_p2 = scmp.lt.s32.totalorder %s539_s17, %s539_s17 }
   0x8   :  { %p546_p3 = por %p545_p2, %p544_p1 }
   0xa   :  { %p547_p4 = pnand %p546_p3, %p540_p0 }
   0xc   :  { %550 = shalt.err (!%p547_p4)
}
   0xd   :  { %s620_s18 = smov 128   ;;  %s621_s19 = smov 8  }
   0xe   :  { %25 = dma.hbm_to_vmem [thread:$0]  %s710_s0, 2048, %s20_s16, [#allocation3], %s620_s18, %s620_s18, %s621_s19  }
   0xf   :  { %s622_s22 = smov [#allocation5]  }
  0x10   :  { %s31_s23 = sshll.u32 %s622_s22, 4  ;;  %s32_s23 = int_to_ptr.vmem [resolvable:$true] %s31_s23 }
  0x11   :  { %s559_s24 = scalar_lea.vmem %s32_s23, 4096  ;;  %p564_p6 = scmp.lt.s32.totalorder %s32_s23, %s32_s23 }
  0x12   :  { %p560_p5 = scmp.ne.s32.totalorder %s32_s23, %s559_s24  ;;  %p565_p7 = scmp.lt.s32.totalorder %s559_s24, %s559_s24 }
  0x14   :  { %p566_p8 = por %p565_p7, %p564_p6 }
  0x16   :  { %p567_p9 = pnand %p566_p8, %p560_p5 }
  0x18   :  { %570 = shalt.err (!%p567_p9)
}
  0x19   :  { %s623_s25 = smov 256   ;;  %s624_s26 = smov 16  }
  0x1a   :  { %37 = dma.hbm_to_vmem [thread:$0]  %s711_s1, 4096, %s32_s23, [#allocation6], %s623_s25, %s623_s25, %s624_s26  }
  0x1b   :  { %611 = dma.done.wait [#allocation3], 2048  }
  0x1c   :  { %612 = vsyncadd [#allocation3], 4294965248 }
  0x1d   :  { %613 = dma.done.wait [#allocation6], 4096  }
  0x1e   :  { %614 = vsyncadd [#allocation6], 4294963200  ;;  %v625_v0 = vmov 0.0   ;;  %v93_v1 = vld [vmem:[#allocation5 + $0xf8] sm:$0xff]  ;;  %v92_v2 = vld [vmem:[#allocation5 + $0xf0] sm:$0xff]  ;;  %s627_s30 = smov [#allocation8]  }
  0x1f   :  { %158 = vmatprep.mubr.f32.mxu0 %v625_v0  ;;  %206 = vmatprep.mubr.f32.mxu1 %v625_v0  ;;  %v91_v3 = vld [vmem:[#allocation5 + $0xe8] sm:$0xff]  ;;  %v90_v4 = vld [vmem:[#allocation5 + $0xe0] sm:$0xff]  ;;  %v89_v5 = vld [vmem:[#allocation5 + $0xd8] sm:$0xff]  ;;  %s391_s5 = sshll.u32 %s627_s30, 4  ;;  %s392_s5 = int_to_ptr.vmem [resolvable:$true] %s391_s5 }
  0x20   :  { %94 = vmatprep.subr.mxu0 %v93_v1  ;;  %488 = vmatprep.subr.mxu1 %v93_v1  ;;  %v88_v6 = vld [vmem:[#allocation5 + $0xd0] sm:$0xff]  ;;  %v87_v7 = vld [vmem:[#allocation5 + $0xc8] sm:$0xff]  ;;  %v86_v8 = vld [vmem:[#allocation5 + $0xc0] sm:$0xff] }
  0x21   :  { %95 = vmatpush1.msra.mxu0 %v92_v2  ;;  %504 = vmatpush1.msra.mxu1 %v92_v2  ;;  %v85_v9 = vld [vmem:[#allocation5 + $0xb8] sm:$0xff]  ;;  %v84_v10 = vld [vmem:[#allocation5 + $0xb0] sm:$0xff]  ;;  %v83_v11 = vld [vmem:[#allocation5 + $0xa8] sm:$0xff] }
  0x22   :  { %96 = vmatprep.subr.mxu0 %v91_v3  ;;  %489 = vmatprep.subr.mxu1 %v91_v3  ;;  %v82_v12 = vld [vmem:[#allocation5 + $0xa0] sm:$0xff]  ;;  %v81_v13 = vld [vmem:[#allocation5 + $0x98] sm:$0xff]  ;;  %v80_v14 = vld [vmem:[#allocation5 + $0x90] sm:$0xff] }
  0x23   :  { %97 = vmatpush1.msra.mxu0 %v90_v4  ;;  %505 = vmatpush1.msra.mxu1 %v90_v4  ;;  %v79_v15 = vld [vmem:[#allocation5 + $0x88] sm:$0xff]  ;;  %v78_v16 = vld [vmem:[#allocation5 + $0x80] sm:$0xff]  ;;  %v77_v17 = vld [vmem:[#allocation5 + $0x78] sm:$0xff] }
  0x24   :  { %98 = vmatprep.subr.mxu0 %v89_v5  ;;  %490 = vmatprep.subr.mxu1 %v89_v5  ;;  %v76_v18 = vld [vmem:[#allocation5 + $0x70] sm:$0xff]  ;;  %v75_v19 = vld [vmem:[#allocation5 + $0x68] sm:$0xff]  ;;  %v74_v20 = vld [vmem:[#allocation5 + $0x60] sm:$0xff] }
  0x25   :  { %99 = vmatpush1.msra.mxu0 %v88_v6  ;;  %506 = vmatpush1.msra.mxu1 %v88_v6  ;;  %v73_v21 = vld [vmem:[#allocation5 + $0x58] sm:$0xff]  ;;  %v72_v22 = vld [vmem:[#allocation5 + $0x50] sm:$0xff]  ;;  %v71_v23 = vld [vmem:[#allocation5 + $0x48] sm:$0xff] }
  0x26   :  { %100 = vmatprep.subr.mxu0 %v87_v7  ;;  %491 = vmatprep.subr.mxu1 %v87_v7  ;;  %v70_v24 = vld [vmem:[#allocation5 + $0x40] sm:$0xff]  ;;  %v69_v25 = vld [vmem:[#allocation5 + $0x38] sm:$0xff]  ;;  %v68_v26 = vld [vmem:[#allocation5 + $0x30] sm:$0xff] }
  0x27   :  { %101 = vmatpush1.msra.mxu0 %v86_v8  ;;  %507 = vmatpush1.msra.mxu1 %v86_v8  ;;  %v67_v27 = vld [vmem:[#allocation5 + $0x28] sm:$0xff]  ;;  %v66_v28 = vld [vmem:[#allocation5 + $0x20] sm:$0xff]  ;;  %v65_v29 = vld [vmem:[#allocation5 + $0x18] sm:$0xff] }
  0x28   :  { %102 = vmatprep.subr.mxu0 %v85_v9  ;;  %492 = vmatprep.subr.mxu1 %v85_v9  ;;  %v64_v30 = vld [vmem:[#allocation5 + $0x10] sm:$0xff]  ;;  %v63_v31 = vld [vmem:[#allocation5 + $0x8] sm:$0xff]  ;;  %v62_v32 = vld [vmem:[#allocation5] sm:$0xff] }
  0x29   :  { %103 = vmatpush1.msra.mxu0 %v84_v10  ;;  %508 = vmatpush1.msra.mxu1 %v84_v10  ;;  %v46_v33 = vld [vmem:[#allocation2] sm:$0xff]  ;;  %v47_v35 = vld [vmem:[#allocation2 + $0x8] sm:$0xff]  ;;  %v48_v37 = vld [vmem:[#allocation2 + $0x10] sm:$0xff] }
  0x2a   :  { %104 = vmatprep.subr.mxu0 %v83_v11  ;;  %493 = vmatprep.subr.mxu1 %v83_v11  ;;  %v54_v34 = vld [vmem:[#allocation2 + $0x40] sm:$0xff]  ;;  %v55_v36 = vld [vmem:[#allocation2 + $0x48] sm:$0xff]  ;;  %v56_v38 = vld [vmem:[#allocation2 + $0x50] sm:$0xff] }
  0x2b   :  { %105 = vmatpush1.msra.mxu0 %v82_v12  ;;  %509 = vmatpush1.msra.mxu1 %v82_v12  ;;  %v49_v39 = vld [vmem:[#allocation2 + $0x18] sm:$0xff]  ;;  %v50_v41 = vld [vmem:[#allocation2 + $0x20] sm:$0xff]  ;;  %v51_v43 = vld [vmem:[#allocation2 + $0x28] sm:$0xff] }
  0x2c   :  { %106 = vmatprep.subr.mxu0 %v81_v13  ;;  %494 = vmatprep.subr.mxu1 %v81_v13  ;;  %v57_v40 = vld [vmem:[#allocation2 + $0x58] sm:$0xff]  ;;  %v58_v42 = vld [vmem:[#allocation2 + $0x60] sm:$0xff]  ;;  %v59_v44 = vld [vmem:[#allocation2 + $0x68] sm:$0xff] }
  0x2d   :  { %107 = vmatpush1.msra.mxu0 %v80_v14  ;;  %510 = vmatpush1.msra.mxu1 %v80_v14  ;;  %v52_v45 = vld [vmem:[#allocation2 + $0x30] sm:$0xff]  ;;  %v53_v47 = vld [vmem:[#allocation2 + $0x38] sm:$0xff]  ;;  %v683_v51 = vld [vmem:[%s712_s2] ss:$0 sm:$0xff]  ;;  %s626_s2 = smov [#allocation7]  }
  0x2e   :  { %108 = vmatprep.subr.mxu0 %v79_v15  ;;  %495 = vmatprep.subr.mxu1 %v79_v15  ;;  %v60_v46 = vld [vmem:[#allocation2 + $0x70] sm:$0xff]  ;;  %v61_v48 = vld [vmem:[#allocation2 + $0x78] sm:$0xff]  ;;  %s379_s29 = sshll.u32 %s626_s2, 4  ;;  %s380_s29 = int_to_ptr.vmem [resolvable:$true] %s379_s29 }
  0x2f   :  { %109 = vmatpush1.msra.mxu0 %v78_v16  ;;  %511 = vmatpush1.msra.mxu1 %v78_v16  ;;  %s571_s6 = scalar_lea.vmem %s380_s29, 1024  ;;  %p576_p11 = scmp.lt.s32.totalorder %s380_s29, %s380_s29 }
  0x30   :  { %110 = vmatprep.subr.mxu0 %v77_v17  ;;  %496 = vmatprep.subr.mxu1 %v77_v17  ;;  %p572_p10 = scmp.ne.s32.totalorder %s380_s29, %s571_s6  ;;  %p577_p12 = scmp.lt.s32.totalorder %s571_s6, %s571_s6 }
  0x31   :  { %111 = vmatpush1.msra.mxu0 %v76_v18  ;;  %512 = vmatpush1.msra.mxu1 %v76_v18 }
  0x32   :  { %112 = vmatprep.subr.mxu0 %v75_v19  ;;  %497 = vmatprep.subr.mxu1 %v75_v19  ;;  %p578_p13 = por %p577_p12, %p576_p11 }
  0x33   :  { %113 = vmatpush1.msra.mxu0 %v74_v20  ;;  %513 = vmatpush1.msra.mxu1 %v74_v20 }
  0x34   :  { %114 = vmatprep.subr.mxu0 %v73_v21  ;;  %498 = vmatprep.subr.mxu1 %v73_v21  ;;  %p579_p0 = pnand %p578_p13, %p572_p10 }
  0x35   :  { %115 = vmatpush1.msra.mxu0 %v72_v22  ;;  %514 = vmatpush1.msra.mxu1 %v72_v22 }
  0x36   :  { %116 = vmatprep.subr.mxu0 %v71_v23  ;;  %499 = vmatprep.subr.mxu1 %v71_v23 }
  0x37   :  { %117 = vmatpush1.msra.mxu0 %v70_v24  ;;  %515 = vmatpush1.msra.mxu1 %v70_v24 }
  0x38   :  { %118 = vmatprep.subr.mxu0 %v69_v25  ;;  %500 = vmatprep.subr.mxu1 %v69_v25 }
  0x39   :  { %119 = vmatpush1.msra.mxu0 %v68_v26  ;;  %516 = vmatpush1.msra.mxu1 %v68_v26 }
  0x3a   :  { %120 = vmatprep.subr.mxu0 %v67_v27  ;;  %501 = vmatprep.subr.mxu1 %v67_v27 }
  0x3b   :  { %121 = vmatpush1.msra.mxu0 %v66_v28  ;;  %517 = vmatpush1.msra.mxu1 %v66_v28 }
  0x3c   :  { %122 = vmatprep.subr.mxu0 %v65_v29  ;;  %502 = vmatprep.subr.mxu1 %v65_v29 }
  0x3d   :  { %123 = vmatpush1.msra.mxu0 %v64_v30  ;;  %518 = vmatpush1.msra.mxu1 %v64_v30 }
  0x3e   :  { %124 = vmatprep.subr.mxu0 %v63_v31  ;;  %503 = vmatprep.subr.mxu1 %v63_v31 }
  0x3f   :  { %125 = vmatpush1.msra.mxu0 %v62_v32  ;;  %519 = vmatpush1.msra.mxu1 %v62_v32 }
  0x40   :  { %159 = vmatmul.mubr.f32.vlgmr.msra.gmra.mxu0 %v46_v33  ;;  %207 = vmatmul.mubr.f32.vlgmr.msra.gmra.mxu1 %v54_v34 }
  0x41   :  { %164 = vmatprep.mubr.f32.mxu0 %v625_v0  ;;  %212 = vmatprep.mubr.f32.mxu1 %v625_v0 }
  0x44   :  { %165 = vmatmul.mubr.f32.gmra.mxu0 %v47_v35  ;;  %213 = vmatmul.mubr.f32.gmra.mxu1 %v55_v36 }
  0x45   :  { %170 = vmatprep.mubr.f32.mxu0 %v625_v0  ;;  %218 = vmatprep.mubr.f32.mxu1 %v625_v0 }
  0x48   :  { %171 = vmatmul.mubr.f32.gmra.mxu0 %v48_v37  ;;  %219 = vmatmul.mubr.f32.gmra.mxu1 %v56_v38 }
  0x49   :  { %176 = vmatprep.mubr.f32.mxu0 %v625_v0  ;;  %224 = vmatprep.mubr.f32.mxu1 %v625_v0 }
  0x4c   :  { %177 = vmatmul.mubr.f32.gmra.mxu0 %v49_v39  ;;  %225 = vmatmul.mubr.f32.gmra.mxu1 %v57_v40 }
  0x4d   :  { %182 = vmatprep.mubr.f32.mxu0 %v625_v0  ;;  %230 = vmatprep.mubr.f32.mxu1 %v625_v0 }
  0x50   :  { %183 = vmatmul.mubr.f32.gmra.mxu0 %v50_v41  ;;  %231 = vmatmul.mubr.f32.gmra.mxu1 %v58_v42 }
  0x51   :  { %188 = vmatprep.mubr.f32.mxu0 %v625_v0  ;;  %236 = vmatprep.mubr.f32.mxu1 %v625_v0 }
  0x54   :  { %189 = vmatmul.mubr.f32.gmra.mxu0 %v51_v43  ;;  %237 = vmatmul.mubr.f32.gmra.mxu1 %v59_v44 }
  0x55   :  { %194 = vmatprep.mubr.f32.mxu0 %v625_v0  ;;  %242 = vmatprep.mubr.f32.mxu1 %v625_v0 }
  0x58   :  { %195 = vmatmul.mubr.f32.gmra.mxu0 %v52_v45  ;;  %243 = vmatmul.mubr.f32.gmra.mxu1 %v60_v46 }
  0x59   :  { %200 = vmatprep.mubr.f32.mxu0 %v625_v0  ;;  %248 = vmatprep.mubr.f32.mxu1 %v625_v0 }
  0x5c   :  { %201 = vmatmul.mubr.f32.gmra.mxu0 %v53_v47  ;;  %249 = vmatmul.mubr.f32.gmra.mxu1 %v61_v48 }
 0x100   :  { %v160_v49 = vpop.f32.mrf.mxu0  ;;  %v208_v50 = vpop.f32.mrf.mxu1 }
 0x102   :  { %v162_v52 = vpop.f32.mrf.mxu0  ;;  %v210_v53 = vpop.f32.mrf.mxu1 }
 0x103   :  { %v342_v54 = vadd.f32 %v683_v51, %v162_v52  ;;  %v350_v55 = vadd.f32 %v683_v51, %v210_v53 }
 0x104   :  { %v166_v56 = vpop.f32.mrf.mxu0  ;;  %v214_v57 = vpop.f32.mrf.mxu1 }
 0x105   :  { %358 = vst [vmem:[#allocation8] sm:$0xff] %v342_v54  ;;  %366 = vst [vmem:[#allocation8 + $0x40] sm:$0xff] %v350_v55  ;;  %v444_v58 = vpack.c.bf16 %v166_v56, %v160_v49  ;;  %v464_v59 = vpack.c.bf16 %v214_v57, %v208_v50 }
 0x106   :  { %v168_v60 = vpop.f32.mrf.mxu0  ;;  %v216_v61 = vpop.f32.mrf.mxu1 }
 0x107   :  { %445 = vst [vmem:[#allocation7] sm:$0xff] %v444_v58   ;;  %484 = vst [vmem:[#allocation7 + $0x20] sm:$0xff] %v464_v59   ;;  %v343_v62 = vadd.f32 %v683_v51, %v168_v60  ;;  %v351_v63 = vadd.f32 %v683_v51, %v216_v61 }
 0x108   :  { %v172_v0 = vpop.f32.mrf.mxu0  ;;  %v220_v1 = vpop.f32.mrf.mxu1 }
 0x109   :  { %359 = vst [vmem:[#allocation8 + $0x8] sm:$0xff] %v343_v62  ;;  %367 = vst [vmem:[#allocation8 + $0x48] sm:$0xff] %v351_v63 }
 0x10a   :  { %v174_v2 = vpop.f32.mrf.mxu0  ;;  %v222_v3 = vpop.f32.mrf.mxu1 }
 0x10b   :  { %v344_v4 = vadd.f32 %v683_v51, %v174_v2  ;;  %v352_v5 = vadd.f32 %v683_v51, %v222_v3 }
 0x10c   :  { %v178_v6 = vpop.f32.mrf.mxu0  ;;  %v226_v7 = vpop.f32.mrf.mxu1 }
 0x10d   :  { %360 = vst [vmem:[#allocation8 + $0x10] sm:$0xff] %v344_v4  ;;  %368 = vst [vmem:[#allocation8 + $0x50] sm:$0xff] %v352_v5  ;;  %v449_v8 = vpack.c.bf16 %v178_v6, %v172_v0  ;;  %v469_v9 = vpack.c.bf16 %v226_v7, %v220_v1 }
 0x10e   :  { %v180_v10 = vpop.f32.mrf.mxu0  ;;  %v228_v11 = vpop.f32.mrf.mxu1 }
 0x10f   :  { %481 = vst [vmem:[#allocation7 + $0x8] sm:$0xff] %v449_v8   ;;  %485 = vst [vmem:[#allocation7 + $0x28] sm:$0xff] %v469_v9   ;;  %v345_v12 = vadd.f32 %v683_v51, %v180_v10  ;;  %v353_v13 = vadd.f32 %v683_v51, %v228_v11 }
 0x110   :  { %v184_v14 = vpop.f32.mrf.mxu0  ;;  %v232_v15 = vpop.f32.mrf.mxu1 }
 0x111   :  { %361 = vst [vmem:[#allocation8 + $0x18] sm:$0xff] %v345_v12  ;;  %369 = vst [vmem:[#allocation8 + $0x58] sm:$0xff] %v353_v13 }
 0x112   :  { %v186_v16 = vpop.f32.mrf.mxu0  ;;  %v234_v17 = vpop.f32.mrf.mxu1 }
 0x113   :  { %v346_v18 = vadd.f32 %v683_v51, %v186_v16  ;;  %v354_v19 = vadd.f32 %v683_v51, %v234_v17 }
 0x114   :  { %v190_v20 = vpop.f32.mrf.mxu0  ;;  %v238_v21 = vpop.f32.mrf.mxu1 }
 0x115   :  { %362 = vst [vmem:[#allocation8 + $0x20] sm:$0xff] %v346_v18  ;;  %370 = vst [vmem:[#allocation8 + $0x60] sm:$0xff] %v354_v19  ;;  %v454_v22 = vpack.c.bf16 %v190_v20, %v184_v14  ;;  %v474_v23 = vpack.c.bf16 %v238_v21, %v232_v15 }
 0x116   :  { %v192_v24 = vpop.f32.mrf.mxu0  ;;  %v240_v25 = vpop.f32.mrf.mxu1 }
 0x117   :  { %482 = vst [vmem:[#allocation7 + $0x10] sm:$0xff] %v454_v22   ;;  %486 = vst [vmem:[#allocation7 + $0x30] sm:$0xff] %v474_v23   ;;  %v347_v26 = vadd.f32 %v683_v51, %v192_v24  ;;  %v355_v27 = vadd.f32 %v683_v51, %v240_v25 }
 0x118   :  { %v196_v28 = vpop.f32.mrf.mxu0  ;;  %v244_v29 = vpop.f32.mrf.mxu1 }
 0x119   :  { %363 = vst [vmem:[#allocation8 + $0x28] sm:$0xff] %v347_v26  ;;  %371 = vst [vmem:[#allocation8 + $0x68] sm:$0xff] %v355_v27 }
 0x11a   :  { %v198_v30 = vpop.f32.mrf.mxu0  ;;  %v246_v31 = vpop.f32.mrf.mxu1 }
 0x11b   :  { %v348_v32 = vadd.f32 %v683_v51, %v198_v30  ;;  %v356_v33 = vadd.f32 %v683_v51, %v246_v31 }
 0x11c   :  { %v202_v34 = vpop.f32.mrf.mxu0  ;;  %v250_v35 = vpop.f32.mrf.mxu1 }
 0x11d   :  { %364 = vst [vmem:[#allocation8 + $0x30] sm:$0xff] %v348_v32  ;;  %372 = vst [vmem:[#allocation8 + $0x70] sm:$0xff] %v356_v33  ;;  %v459_v36 = vpack.c.bf16 %v202_v34, %v196_v28  ;;  %v479_v37 = vpack.c.bf16 %v250_v35, %v244_v29 }
 0x11e   :  { %v204_v38 = vpop.f32.mrf.mxu0  ;;  %v252_v39 = vpop.f32.mrf.mxu1 }
 0x11f   :  { %483 = vst [vmem:[#allocation7 + $0x18] sm:$0xff] %v459_v36   ;;  %487 = vst [vmem:[#allocation7 + $0x38] sm:$0xff] %v479_v37   ;;  %v349_v40 = vadd.f32 %v683_v51, %v204_v38  ;;  %v357_v41 = vadd.f32 %v683_v51, %v252_v39 }
 0x120   :  { %582 = shalt.err (!%p579_p0)
}
 0x121   :  { %s628_s7 = smov 64   ;;  %s629_s8 = smov 4   ;;  %365 = vst [vmem:[#allocation8 + $0x38] sm:$0xff] %v349_v40  ;;  %373 = vst [vmem:[#allocation8 + $0x78] sm:$0xff] %v357_v41 }
 0x122   :  { %385 = dma.vmem_to_hbm [thread:$0]  %s380_s29, 1024, %s713_s3, [#allocation4], %s628_s7, %s628_s7, %s629_s8  }
 0x123   :  { %s591_s11 = scalar_lea.vmem %s392_s5, 2048  ;;  %p596_p2 = scmp.lt.s32.totalorder %s392_s5, %s392_s5 }
 0x124   :  { %p592_p1 = scmp.ne.s32.totalorder %s392_s5, %s591_s11  ;;  %p597_p3 = scmp.lt.s32.totalorder %s591_s11, %s591_s11 }
 0x126   :  { %p598_p4 = por %p597_p3, %p596_p2 }
 0x128   :  { %p599_p5 = pnand %p598_p4, %p592_p1 }
 0x12a   :  { %602 = shalt.err (!%p599_p5)
}
 0x12b   :  { %397 = dma.vmem_to_hbm [thread:$0]  %s392_s5, 2048, %s714_s4, [#allocation9], %s620_s18, %s620_s18, %s621_s19  }
 0x12c   :  { %615 = dma.done.wait [#allocation4], 1024  }
 0x12d   :  { %616 = vsyncadd [#allocation4], 4294966272 }
 0x12e   :  { %617 = dma.done.wait [#allocation9], 2048  }
 0x12f   :  { %618 = vsyncadd [#allocation9], 4294965248 }
 0x130   :  { %404 = vsyncpa [#allocation3], 1 }
 0x131   :  { %405 = vsyncpa [#allocation6], 1 }
 0x132   :  { %406 = vsyncpa [#allocation4], 1 }
 0x133   :  { %407 = vsyncpa [#allocation9], 1 }

</bundles_post_ra>
